<compile_context>
chip_gen: v7x
topology: tpu7x:2x2x1
jax: 0.10.0
libtpu: 0.0.40
codegen_flags: <defaults>
</compile_context>

<pallas_src>
import functools

import jax
import jax.numpy as jnp
from jax import lax
from jax.experimental import pallas as pl
from jax.experimental.pallas import tpu as pltpu


def _round_up(n, m):
    return ((n + m - 1) // m) * m


def _device_kind():
    try:
        return jax.devices()[0].device_kind.lower()
    except Exception:
        return ""


def _default_bf16_tanh():
    # bf16 EUP/VPU exist on v6e/v7x; keep f32 tanh on v5-class chips.
    return "v5" not in _device_kind()


def _default_batch_tile(b):
    kind = _device_kind()
    if "v6" in kind and b >= 256:
        return 256      # v6e MXU is 256-wide in M; halves per-grid-step overhead
    return 128          # v5e (128-wide MXU); v7x (>=2 parallel tiles for 2 TCs)


# ---------------------------------------------------------------------------
# Kernel 1: single vector-field evaluation  (== NeuralODE.forward)
# ---------------------------------------------------------------------------
def _vf_kernel(h_ref, t_ref, x_ref, w1h_ref, w1t_ref, w1x_ref, b1_ref,
               w2_ref, b2_ref, out_ref, *, bf16_tanh):
    # h:(TB,Dh)f32  t:(TB,1)f32  x:(TB,Dx)f32
    # w1h:(Dh,HP)bf16  w1t:(1,HP)f32  w1x:(Dx,HP)bf16  b1:(1,HP)f32
    # w2:(HP,OP)bf16  b2:(1,OP)f32  out:(TB,OP)
    bf = jnp.bfloat16
    acc = jnp.dot(h_ref[...].astype(bf), w1h_ref[...],
                  preferred_element_type=jnp.float32)
    acc = acc + jnp.dot(x_ref[...].astype(bf), w1x_ref[...],
                        preferred_element_type=jnp.float32)
    acc = acc + t_ref[...] * w1t_ref[...]          # VPU rank-1 time update
    acc = acc + b1_ref[...]
    h = jnp.tanh(acc.astype(bf)) if bf16_tanh else jnp.tanh(acc)
    o = jnp.dot(h.astype(bf), w2_ref[...], preferred_element_type=jnp.float32)
    out_ref[...] = (o + b2_ref[...]).astype(out_ref.dtype)


def prepare_vector_field(params, dh, dx):
    """One-time (per model) split / pad / cast of the MLP vector field."""
    w1, b1, w2, b2 = params
    dz, hdim = w1.shape
    assert dz == dh + 1 + dx, "w1 rows must match cat([hidden, t, input])"
    do = w2.shape[1]
    hp = _round_up(hdim, 128)
    op = _round_up(do, 128)

    w1_h = jnp.pad(w1[:dh], ((0, 0), (0, hp - hdim))).astype(jnp.bfloat16)
    w1_t = jnp.pad(w1[dh:dh + 1], ((0, 0), (0, hp - hdim))).astype(jnp.float32)
    w1_x = jnp.pad(w1[dh + 1:], ((0, 0), (0, hp - hdim))).astype(jnp.bfloat16)
    b1_p = jnp.pad(jnp.reshape(b1, (1, -1)),
                   ((0, 0), (0, hp - hdim))).astype(jnp.float32)
    w2_p = jnp.pad(w2, ((0, hp - hdim), (0, op - do))).astype(jnp.bfloat16)
    b2_p = jnp.pad(jnp.reshape(b2, (1, -1)),
                   ((0, 0), (0, op - do))).astype(jnp.float32)
    return (w1_h, w1_t, w1_x, b1_p, w2_p, b2_p)


@functools.partial(jax.jit, static_argnames=("batch_tile", "bf16_tanh",
                                             "out_dtype", "return_padded"))
def neural_ode_forward(hidden, t, x, vf_params, *, batch_tile=None,
                       bf16_tanh=None, out_dtype=jnp.float32,
                       return_padded=False):
    """NeuralODE.forward(hidden, t, input) -> d(hidden)/dt, shape (B, Dh)."""
    w1_h, w1_t, w1_x, b1_p, w2_p, b2_p = vf_params
    b, dh = hidden.shape
    dx = x.shape[1]
    hp = w1_h.shape[1]
    op = w2_p.shape[1]
    if batch_tile is None:
        batch_tile = _default_batch_tile(b)
    if bf16_tanh is None:
        bf16_tanh = _default_bf16_tanh()

    bp = _round_up(b, batch_tile)
    if bp != b:   # never triggers when B is a multiple of the tile (demo case)
        pad = ((0, bp - b), (0, 0))
        hidden = jnp.pad(hidden, pad)
        t = jnp.pad(t, pad)
        x = jnp.pad(x, pad)

    out = pl.pallas_call(
        functools.partial(_vf_kernel, bf16_tanh=bf16_tanh),
        out_shape=jax.ShapeDtypeStruct((bp, op), out_dtype),
        grid=(bp // batch_tile,),
        in_specs=[
            pl.BlockSpec((batch_tile, dh), lambda i: (i, 0)),   # hidden tile
            pl.BlockSpec((batch_tile, 1), lambda i: (i, 0)),    # t tile
            pl.BlockSpec((batch_tile, dx), lambda i: (i, 0)),   # x tile
            pl.BlockSpec((dh, hp), lambda i: (0, 0)),           # w1_h (resident)
            pl.BlockSpec((1, hp), lambda i: (0, 0)),            # w1_t (resident)
            pl.BlockSpec((dx, hp), lambda i: (0, 0)),           # w1_x (resident)
            pl.BlockSpec((1, hp), lambda i: (0, 0)),            # b1   (resident)
            pl.BlockSpec((hp, op), lambda i: (0, 0)),           # w2   (resident)
            pl.BlockSpec((1, op), lambda i: (0, 0)),            # b2   (resident)
        ],
        out_specs=pl.BlockSpec((batch_tile, op), lambda i: (i, 0)),
        compiler_params=pltpu.CompilerParams(
            dimension_semantics=("parallel",),
            vmem_limit_bytes=32 * 1024 * 1024),
    )(hidden, t, x, w1_h, w1_t, w1_x, b1_p, w2_p, b2_p)

    if return_padded:
        return out            # (bp, OP=128) lane-dense padded derivative
    return out[:b, :dh]       # module semantics: (B, Dh)


# ---------------------------------------------------------------------------
# Kernel 2: fused fixed-step Euler solver (state stays padded & VMEM-resident)
# ---------------------------------------------------------------------------
def _fused_euler_kernel(h0_ref, t0_ref, x_ref, w1s_ref, w1t_ref, w1x_ref,
                        b1_ref, w2_ref, b2_ref, out_ref, *, n_steps, dt,
                        bf16_tanh):
    # h0:(TB,SP)f32  t0:(TB,1)f32  x:(TB,Dx)f32
    # w1s:(SP,HP)bf16 (zero rows Dh..SP-1)  w1t:(1,HP)f32  w1x:(Dx,HP)bf16
    # b1:(1,HP)f32  w2:(HP,SP)bf16  b2:(1,SP)f32  out:(TB,SP)f32
    bf = jnp.bfloat16
    f32 = jnp.float32
    # Hoisted: x contribution + bias are constant across solver steps.
    xc = jnp.dot(x_ref[...].astype(bf), w1x_ref[...],
                 preferred_element_type=f32) + b1_ref[...]
    t0 = t0_ref[...].astype(f32)
    w1t = w1t_ref[...]
    w1s = w1s_ref[...]
    w2 = w2_ref[...]
    b2 = b2_ref[...]

    def step(i, h):
        t = t0 + dt * i
        acc = jnp.dot(h.astype(bf), w1s, preferred_element_type=f32)
        acc = acc + xc + t * w1t
        hh = jnp.tanh(acc.astype(bf)) if bf16_tanh else jnp.tanh(acc)
        f = jnp.dot(hh.astype(bf), w2, preferred_element_type=f32) + b2
        return h + dt * f

    out_ref[...] = lax.fori_loop(0, n_steps, step,
                                 h0_ref[...].astype(f32),
                                 unroll=(n_steps <= 16))


def prepare_vector_field_fused(params, dh, dx):
    """As prepare_vector_field, plus W1 hidden-rows padded to the padded state dim."""
    w1_h, w1_t, w1_x, b1_p, w2_p, b2_p = prepare_vector_field(params, dh, dx)
    sp = w2_p.shape[1]                       # padded state/output dim (=128)
    assert sp >= dh and sp % 128 == 0
    w1_s = jnp.pad(w1_h, ((0, sp - dh), (0, 0)))
    return (w1_s, w1_t, w1_x, b1_p, w2_p, b2_p)


@functools.partial(jax.jit, static_argnames=("n_steps", "dt", "batch_tile",
                                             "bf16_tanh"))
def neural_ode_euler(hidden, t0, x, fused_params, *, n_steps, dt,
                     batch_tile=None, bf16_tanh=None):
    """Fixed-step Euler: returns the padded (B, SP) state after n_steps."""
    w1_s, w1_t, w1_x, b1_p, w2_p, b2_p = fused_params
    sp, hp = w1_s.shape
    b = hidden.shape[0]
    dx = x.shape[1]
    if batch_tile is None:
        batch_tile = _default_batch_tile(b)
    if bf16_tanh is None:
        bf16_tanh = _default_bf16_tanh()

    if hidden.shape[1] != sp:                     # pad state columns once
        hidden = jnp.pad(hidden, ((0, 0), (0, sp - hidden.shape[1])))
    bp = _round_up(b, batch_tile)
    if bp != b:
        hidden = jnp.pad(hidden, ((0, bp - b), (0, 0)))
        t0 = jnp.pad(t0, ((0, bp - b), (0, 0)))
        x = jnp.pad(x, ((0, bp - b), (0, 0)))

    out = pl.pallas_call(
        functools.partial(_fused_euler_kernel, n_steps=n_steps, dt=float(dt),
                          bf16_tanh=bf16_tanh),
        out_shape=jax.ShapeDtypeStruct((bp, sp), jnp.float32),
        grid=(bp // batch_tile,),
        in_specs=[
            pl.BlockSpec((batch_tile, sp), lambda i: (i, 0)),   # h0 (padded)
            pl.BlockSpec((batch_tile, 1), lambda i: (i, 0)),    # t0
            pl.BlockSpec((batch_tile, dx), lambda i: (i, 0)),   # x
            pl.BlockSpec((sp, hp), lambda i: (0, 0)),           # w1_s (resident)
            pl.BlockSpec((1, hp), lambda i: (0, 0)),            # w1_t
            pl.BlockSpec((dx, hp), lambda i: (0, 0)),           # w1_x
            pl.BlockSpec((1, hp), lambda i: (0, 0)),            # b1
            pl.BlockSpec((hp, sp), lambda i: (0, 0)),           # w2
            pl.BlockSpec((1, sp), lambda i: (0, 0)),            # b2
        ],
        out_specs=pl.BlockSpec((batch_tile, sp), lambda i: (i, 0)),
        compiler_params=pltpu.CompilerParams(
            dimension_semantics=("parallel",),
            vmem_limit_bytes=32 * 1024 * 1024),
    )(hidden, t0, x, w1_s, w1_t, w1_x, b1_p, w2_p, b2_p)
    return out


# ---------------------------------------------------------------------------
# References / init
# ---------------------------------------------------------------------------
def init_params(key, dz, h, dh):
    """PyTorch Linear-style init, stored transposed as (in, out)."""
    k1, k2, k3, k4 = jax.random.split(key, 4)
    s1 = 1.0 / jnp.sqrt(dz)
    s2 = 1.0 / jnp.sqrt(h)
    w1 = jax.random.uniform(k1, (dz, h), jnp.float32, -s1, s1)
    b1 = jax.random.uniform(k2, (1, h), jnp.float32, -s1, s1)
    w2 = jax.random.uniform(k3, (h, dh), jnp.float32, -s2, s2)
    b2 = jax.random.uniform(k4, (1, dh), jnp.float32, -s2, s2)
    return w1, b1, w2, b2


def _reference_f32(hidden, t, x, params):
    w1, b1, w2, b2 = params
    z = jnp.concatenate([hidden, t, x], axis=1)
    return jnp.tanh(z @ w1 + b1) @ w2 + b2


def _reference_matched(hidden, t, x, params, *, bf16_tanh):
    """Mirrors the kernel's dtype policy (bf16 MXU operands, f32 accumulate)."""
    w1, b1, w2, b2 = params
    dh = hidden.shape[1]
    bf = jnp.bfloat16
    pre = (jnp.dot(hidden.astype(bf), w1[:dh].astype(bf),
                   preferred_element_type=jnp.float32)
           + jnp.dot(x.astype(bf), w1[dh + 1:].astype(bf),
                     preferred_element_type=jnp.float32)
           + t * w1[dh:dh + 1] + b1)
    h = jnp.tanh(pre.astype(bf)) if bf16_tanh else jnp.tanh(pre)
    return jnp.dot(h.astype(bf), w2.astype(bf),
                   preferred_element_type=jnp.float32) + b2


def _euler_reference(hidden, t0, x, params, n_steps, dt, *, bf16_tanh):
    h = hidden
    for i in range(n_steps):
        f = _reference_matched(h, t0 + dt * i, x, params, bf16_tanh=bf16_tanh)
        h = h + dt * f
    return h


if __name__ == "__main__":
    key = jax.random.PRNGKey(0)
    kh, kt, kx, kp = jax.random.split(key, 4)

    B = 256        # multiple of the batch tile -> no padding ops in wrapper
    Dh = 32        # ODE hidden-state dim (vector-field output dim)
    Dx = 16        # data (input) dim
    H = 64         # vector-field MLP width (padded to 128 in-kernel)
    Dz = Dh + 1 + Dx

    hidden = jax.random.normal(kh, (B, Dh), jnp.float32)
    t = jax.random.uniform(kt, (B, 1), jnp.float32)
    x = jax.random.normal(kx, (B, Dx), jnp.float32)
    params = init_params(kp, Dz, H, Dh)
    bf16_tanh = _default_bf16_tanh()

    # --- 1) module forward(): one vector-field evaluation --------------------
    vf = prepare_vector_field(params, Dh, Dx)       # hoisted: once per model
    out = jax.block_until_ready(neural_ode_forward(hidden, t, x, vf))
    assert out.shape == (B, Dh)
    ref_m = _reference_matched(hidden, t, x, params, bf16_tanh=bf16_tanh)
    assert jnp.allclose(out, ref_m, atol=1e-2, rtol=1e-2)
    ref32 = _reference_f32(hidden, t, x, params)    # original f32 semantics
    assert jnp.allclose(out, ref32, atol=5e-2, rtol=5e-2)

    # --- 2) fused fixed-step Euler loop (solver amortization) ---------------
    # TODO(synk): torchdiffeq's adaptive dopri5 step-size control is outside
    # forward(); this fused kernel demonstrates the fixed-step amortization.
    vff = prepare_vector_field_fused(params, Dh, Dx)
    n_steps, dt = 8, 0.05
    sp = vff[0].shape[0]
    h_pad0 = jnp.pad(hidden, ((0, 0), (0, sp - Dh)))     # carry padded state
    h_pad = jax.block_until_ready(
        neural_ode_euler(h_pad0, t, x, vff, n_steps=n_steps, dt=dt))
    assert h_pad.shape == (B, sp)
    ref_e = _euler_reference(hidden, t, x, params, n_steps, dt,
                             bf16_tanh=bf16_tanh)
    assert jnp.allclose(h_pad[:, :Dh], ref_e, atol=2e-2, rtol=2e-2)
    assert jnp.all(h_pad[:, Dh:] == 0.0)     # padded lanes stay exactly zero

    print("KERNEL_OK")
</pallas_src>

<mosaic_0001>
module attributes {stable_mosaic.version = 11 : i64} {
  func.func @_vf_kernel(%arg0: i32, %arg1: memref<128x32xf32, #tpu.memory_space<vmem>>, %arg2: memref<128x1xf32, #tpu.memory_space<vmem>>, %arg3: memref<128x16xf32, #tpu.memory_space<vmem>>, %arg4: memref<32x128xbf16, #tpu.memory_space<vmem>>, %arg5: memref<1x128xf32, #tpu.memory_space<vmem>>, %arg6: memref<16x128xbf16, #tpu.memory_space<vmem>>, %arg7: memref<1x128xf32, #tpu.memory_space<vmem>>, %arg8: memref<128x128xbf16, #tpu.memory_space<vmem>>, %arg9: memref<1x128xf32, #tpu.memory_space<vmem>>, %arg10: memref<128x128xf32, #tpu.memory_space<vmem>>) attributes {dimension_semantics = [#tpu.dimension_semantics<parallel>], iteration_bounds = array<i64: 2>, scalar_prefetch = 0 : i64, scratch_operands = 0 : i64, tpu.core_type = #tpu.core_type<tc>, window_params = [{transform_indices = @transform_0, window_bounds = array<i64: 128, 32>}, {transform_indices = @transform_1, window_bounds = array<i64: 128, 1>}, {transform_indices = @transform_2, window_bounds = array<i64: 128, 16>}, {pipeline_mode = #tpu.pipeline_mode<synchronous>, transform_indices = @transform_3, window_bounds = array<i64: 32, 128>}, {pipeline_mode = #tpu.pipeline_mode<synchronous>, transform_indices = @transform_4, window_bounds = array<i64: 1, 128>}, {pipeline_mode = #tpu.pipeline_mode<synchronous>, transform_indices = @transform_5, window_bounds = array<i64: 16, 128>}, {pipeline_mode = #tpu.pipeline_mode<synchronous>, transform_indices = @transform_6, window_bounds = array<i64: 1, 128>}, {pipeline_mode = #tpu.pipeline_mode<synchronous>, transform_indices = @transform_7, window_bounds = array<i64: 128, 128>}, {pipeline_mode = #tpu.pipeline_mode<synchronous>, transform_indices = @transform_8, window_bounds = array<i64: 1, 128>}, {transform_indices = @transform_9, window_bounds = array<i64: 128, 128>}]} {
    %c0 = arith.constant 0 : index
    %c0_0 = arith.constant 0 : index
    %0 = vector.load %arg1[%c0, %c0_0] : memref<128x32xf32, #tpu.memory_space<vmem>>, vector<128x32xf32>
    %1 = arith.truncf %0 : vector<128x32xf32> to vector<128x32xbf16>
    %c0_1 = arith.constant 0 : index
    %c0_2 = arith.constant 0 : index
    %2 = vector.load %arg4[%c0_1, %c0_2] : memref<32x128xbf16, #tpu.memory_space<vmem>>, vector<32x128xbf16>
    %cst = arith.constant dense<0.000000e+00> : vector<128x128xf32>
    %3 = tpu.matmul %1, %2, %cst {dimension_numbers = #tpu.dot_dimension_numbers<[1], [0], [0], [1], [0, 0, 1, 1], [], []>} : vector<128x32xbf16>, vector<32x128xbf16>, vector<128x128xf32> -> vector<128x128xf32>
    %c0_3 = arith.constant 0 : index
    %c0_4 = arith.constant 0 : index
    %4 = vector.load %arg3[%c0_3, %c0_4] : memref<128x16xf32, #tpu.memory_space<vmem>>, vector<128x16xf32>
    %5 = arith.truncf %4 : vector<128x16xf32> to vector<128x16xbf16>
    %c0_5 = arith.constant 0 : index
    %c0_6 = arith.constant 0 : index
    %6 = vector.load %arg6[%c0_5, %c0_6] : memref<16x128xbf16, #tpu.memory_space<vmem>>, vector<16x128xbf16>
    %cst_7 = arith.constant dense<0.000000e+00> : vector<128x128xf32>
    %7 = tpu.matmul %5, %6, %cst_7 {dimension_numbers = #tpu.dot_dimension_numbers<[1], [0], [0], [1], [0, 0, 1, 1], [], []>} : vector<128x16xbf16>, vector<16x128xbf16>, vector<128x128xf32> -> vector<128x128xf32>
    %8 = arith.addf %3, %7 : vector<128x128xf32>
    %c0_8 = arith.constant 0 : index
    %c0_9 = arith.constant 0 : index
    %9 = vector.load %arg2[%c0_8, %c0_9] : memref<128x1xf32, #tpu.memory_space<vmem>>, vector<128x1xf32>
    %c0_10 = arith.constant 0 : index
    %c0_11 = arith.constant 0 : index
    %10 = vector.load %arg5[%c0_10, %c0_11] : memref<1x128xf32, #tpu.memory_space<vmem>>, vector<1x128xf32>
    %11 = vector.broadcast %9 : vector<128x1xf32> to vector<128x128xf32>
    %12 = vector.broadcast %10 : vector<1x128xf32> to vector<128x128xf32>
    %13 = arith.mulf %11, %12 : vector<128x128xf32>
    %14 = arith.addf %8, %13 : vector<128x128xf32>
    %c0_12 = arith.constant 0 : index
    %c0_13 = arith.constant 0 : index
    %15 = vector.load %arg7[%c0_12, %c0_13] : memref<1x128xf32, #tpu.memory_space<vmem>>, vector<1x128xf32>
    %16 = vector.broadcast %15 : vector<1x128xf32> to vector<128x128xf32>
    %17 = arith.addf %14, %16 : vector<128x128xf32>
    %18 = arith.truncf %17 : vector<128x128xf32> to vector<128x128xbf16>
    %19 = math.tanh %18 : vector<128x128xbf16>
    %c0_14 = arith.constant 0 : index
    %c0_15 = arith.constant 0 : index
    %20 = vector.load %arg8[%c0_14, %c0_15] : memref<128x128xbf16, #tpu.memory_space<vmem>>, vector<128x128xbf16>
    %cst_16 = arith.constant dense<0.000000e+00> : vector<128x128xf32>
    %21 = tpu.matmul %19, %20, %cst_16 {dimension_numbers = #tpu.dot_dimension_numbers<[1], [0], [0], [1], [0, 0, 1, 1], [], []>} : vector<128x128xbf16>, vector<128x128xbf16>, vector<128x128xf32> -> vector<128x128xf32>
    %c0_17 = arith.constant 0 : index
    %c0_18 = arith.constant 0 : index
    %22 = vector.load %arg9[%c0_17, %c0_18] : memref<1x128xf32, #tpu.memory_space<vmem>>, vector<1x128xf32>
    %23 = vector.broadcast %22 : vector<1x128xf32> to vector<128x128xf32>
    %24 = arith.addf %21, %23 : vector<128x128xf32>
    %c0_19 = arith.constant 0 : index
    %c0_20 = arith.constant 0 : index
    %25 = vector.load %arg10[%c0_19, %c0_20] : memref<128x128xf32, #tpu.memory_space<vmem>>, vector<128x128xf32>
    tpu.vector_store %arg10[%c0_19, %c0_20], %24 {strides = array<i32>} : memref<128x128xf32, #tpu.memory_space<vmem>>, vector<128x128xf32>,
    return
  }
  func.func @transform_0(%arg0: i32) -> (i32, i32) {
    %c0_i32 = arith.constant 0 : i32
    %c0_i32_0 = arith.constant 0 : i32
    return %arg0, %c0_i32 : i32, i32
  }
  func.func @transform_1(%arg0: i32) -> (i32, i32) {
    %c0_i32 = arith.constant 0 : i32
    %c0_i32_0 = arith.constant 0 : i32
    return %arg0, %c0_i32 : i32, i32
  }
  func.func @transform_2(%arg0: i32) -> (i32, i32) {
    %c0_i32 = arith.constant 0 : i32
    %c0_i32_0 = arith.constant 0 : i32
    return %arg0, %c0_i32 : i32, i32
  }
  func.func @transform_3(%arg0: i32) -> (i32, i32) {
    %c0_i32 = arith.constant 0 : i32
    %c0_i32_0 = arith.constant 0 : i32
    %c0_i32_1 = arith.constant 0 : i32
    return %c0_i32, %c0_i32_0 : i32, i32
  }
  func.func @transform_4(%arg0: i32) -> (i32, i32) {
    %c0_i32 = arith.constant 0 : i32
    %c0_i32_0 = arith.constant 0 : i32
    %c0_i32_1 = arith.constant 0 : i32
    return %c0_i32, %c0_i32_0 : i32, i32
  }
  func.func @transform_5(%arg0: i32) -> (i32, i32) {
    %c0_i32 = arith.constant 0 : i32
    %c0_i32_0 = arith.constant 0 : i32
    %c0_i32_1 = arith.constant 0 : i32
    return %c0_i32, %c0_i32_0 : i32, i32
  }
  func.func @transform_6(%arg0: i32) -> (i32, i32) {
    %c0_i32 = arith.constant 0 : i32
    %c0_i32_0 = arith.constant 0 : i32
    %c0_i32_1 = arith.constant 0 : i32
    return %c0_i32, %c0_i32_0 : i32, i32
  }
  func.func @transform_7(%arg0: i32) -> (i32, i32) {
    %c0_i32 = arith.constant 0 : i32
    %c0_i32_0 = arith.constant 0 : i32
    %c0_i32_1 = arith.constant 0 : i32
    return %c0_i32, %c0_i32_0 : i32, i32
  }
  func.func @transform_8(%arg0: i32) -> (i32, i32) {
    %c0_i32 = arith.constant 0 : i32
    %c0_i32_0 = arith.constant 0 : i32
    %c0_i32_1 = arith.constant 0 : i32
    return %c0_i32, %c0_i32_0 : i32, i32
  }
  func.func @transform_9(%arg0: i32) -> (i32, i32) {
    %c0_i32 = arith.constant 0 : i32
    %c0_i32_0 = arith.constant 0 : i32
    return %arg0, %c0_i32 : i32, i32
  }
}

</mosaic_0001>

<bundles_post_ra>
// kernel: neural_ode_forward.1
= control target key start
LH: loop header
LB: loop body
LE: loop exit
PB: predicated region body
PF: predicated region fallthrough
CT: control target
= control target key end

     0   :  { %s1398_s30 = smov 0   ;;  %s1593_s0 = inlined_call_operand.vmem [shape: f32[256,32], index: 0, kind: input, shape index: {}]   ;;  %s1594_s1 = inlined_call_operand.vmem [shape: f32[256,1], index: 1, kind: input, shape index: {}]   ;;  %s1595_s2 = inlined_call_operand.vmem [shape: f32[256,16], index: 2, kind: input, shape index: {}]   ;;  %s1596_s3 = inlined_call_operand.vmem [shape: bf16[32,128], index: 3, kind: input, shape index: {}]   ;;  %s1597_s4 = inlined_call_operand.vmem [shape: f32[1,128], index: 4, kind: input, shape index: {}]   ;;  %s1598_s5 = inlined_call_operand.vmem [shape: bf16[16,128], index: 5, kind: input, shape index: {}]   ;;  %s1599_s6 = inlined_call_operand.vmem [shape: f32[1,128], index: 6, kind: input, shape index: {}]   ;;  %s1600_s7 = inlined_call_operand.vmem [shape: bf16[128,128], index: 7, kind: input, shape index: {}]   ;;  %s1601_s8 = inlined_call_operand.vmem [shape: f32[1,128], index: 8, kind: input, shape index: {}]   ;;  %s1602_s9 = inlined_call_operand.vmem [shape: f32[256,128], index: 9, kind: output, shape index: {}]  }
   0x1 LB: > { %s1135_s10 = sadd.s32 4294967295, %s1345_s30   ;;  %p1139_p0 = scmp.ge.s32.totalorder %s1345_s30, 1  ;;  %s1345_s30 = sphi %s1398_s30, %s19_s30  }
   0x2   : > { %p310_p1 = scmp.lt.s32.totalorder %s1345_s30, 3 }
   0x4   : > { %p311_p2 = pnand %p1139_p0, %p310_p1 }
   0x5   : > { %v1312_v0 = vld [vmem:[%s1598_s5] sm:$0xff] (!%p311_p2)   ;;  %s1140_s13 = sshll.u32 (!%p311_p2), %s1135_s10, 4  ;;  %v1347_v2 = vmov (!%p311_p2), 0   ;;  %vm441_vm0 = vcmask (!%p311_p2), 130048   ;;  %v1314_v12 = vld [vmem:[%s1596_s3 + $0x8] sm:$0xff] (!%p311_p2)   ;;  %vm575_vm1 = vcmask (!%p311_p2), 261120  }
   0x6   : > { %314 = sbr.rel (%p311_p2) target bundleno = 528 (0x210), region = 56  ;;  %p357_p3 = scmp.lt.s32.totalorder (!%p311_p2), %s1140_s13, 31  ;;  %1215 = vmatprep.subr.bf16.mxu0 (!%p311_p2), %v1312_v0  ;;  %v1313_v1 = vld [vmem:[%s1596_s3] sm:$0xff] (!%p311_p2)   ;;  %1310 = vset.pattern.permute.xlu0 (!%p311_p2), %v1347_v2  ;;  %v1316_v53 = vld [vmem:[%s1600_s7 + $0x8] sm:$0xff] (!%p311_p2)   ;;  %v1317_v60 = vld [vmem:[%s1600_s7 + $0x10] sm:$0xff] (!%p311_p2)  }
   0x7   : > { %1216 = vmatpush3.bf16.msra.mxu0 (!%p311_p2), %v1312_v0  ;;  %1311 = vset.pattern.permute.xlu1 (!%p311_p2), %v1347_v2  ;;  %v1315_v49 = vld [vmem:[%s1600_s7] sm:$0xff] (!%p311_p2)  }
   0x8   : > { %1233 = vmatprep.subr.bf16.mxu0 (!%p311_p2), %v1313_v1  ;;  %1253 = vmatprep.subr.bf16.mxu1 (!%p311_p2), %v1315_v49 }
   0x9   : > { %1254 = vmatpush3.bf16.msra.mxu1 (!%p311_p2), %v1315_v49 }
   0xa   : > { %1255 = vmatprep.subr.bf16.mxu1 (!%p311_p2), %v1316_v53 }
   0xd   : > { %s1604_s13 = smov (!%p357_p3, %s1140_s13), 31  ;;  %1256 = vmatpush3.bf16.msra.mxu1 %v1316_v53 }
   0xe   : > { %s1412_s16 = sshll.u32 %s1604_s13, 3  ;;  %1257 = vmatprep.subr.bf16.mxu1 %v1317_v60 }
   0xf   : > { %s1418_s19 = scalar_lea.vmem %s1595_s2, %s1412_s16  ;;  %s1440_s24 = scalar_lea.vmem %s1594_s1, %s1412_s16 }
  0x10   : > { %v409_v3 = vld [vmem:[%s1418_s19] sm:$0xff]  ;;  %v410_v4 = vld [vmem:[%s1418_s19 + $0x8] sm:$0xff]  ;;  %v411_v5 = vld [vmem:[%s1418_s19 + $0x10] sm:$0xff]  ;;  %s1458_s27 = scalar_lea.vmem %s1593_s0, %s1412_s16  ;;  %s1572_s13 = scalar_lea.vmem %s1602_s9, %s1412_s16 }
  0x11   : > { %v425_v6 = vpack.c.bf16 %v410_v4, %v409_v3  ;;  %v412_v7 = vld [vmem:[%s1418_s19 + $0x18] sm:$0xff]  ;;  %v413_v8 = vld [vmem:[%s1418_s19 + $0x20] sm:$0xff]  ;;  %v414_v9 = vld [vmem:[%s1418_s19 + $0x28] sm:$0xff]  ;;  %1258 = vmatpush3.bf16.msra.mxu1 %v1317_v60 }
  0x12   : > { %v426_v10 = vpack.c.bf16 %v412_v7, %v411_v5  ;;  %v427_v11 = vpack.c.bf16 %v414_v9, %v413_v8  ;;  %v415_v13 = vld [vmem:[%s1418_s19 + $0x30] sm:$0xff]  ;;  %v416_v14 = vld [vmem:[%s1418_s19 + $0x38] sm:$0xff]  ;;  %v417_v15 = vld [vmem:[%s1418_s19 + $0x40] sm:$0xff] }
  0x13   : > { %1217 = vmatprep.mubr.msk.bf16.mxu0 %vm441_vm0, %v425_v6  ;;  %v418_v16 = vld [vmem:[%s1418_s19 + $0x48] sm:$0xff]  ;;  %v428_v17 = vpack.c.bf16 %v416_v14, %v415_v13  ;;  %v697_v19 = vld [vmem:[%s1440_s24] sm:$0xff]  ;;  %v699_v20 = vld [vmem:[%s1440_s24 + $0x10] sm:$0xff] }
  0x14   : > { %1218 = vmatmul.mubr.msk.bf16.vlgmr.msra.gmra.mrb[0].mxu0 %vm441_vm0, %v426_v10  ;;  %v429_v18 = vpack.c.bf16 %v418_v16, %v417_v15  ;;  %716 = vperm.xlu0 %1310, %v697_v19   ;;  %v698_v21 = vld [vmem:[%s1440_s24 + $0x8] sm:$0xff]  ;;  %v419_v22 = vld [vmem:[%s1418_s19 + $0x50] sm:$0xff]  ;;  %v420_v23 = vld [vmem:[%s1418_s19 + $0x58] sm:$0xff] }
  0x15   : > { %1234 = vmatpush3.bf16.msra.mxu0 %v1313_v1  ;;  %1221 = vmatprep.mubr.msk.bf16.mxu0 %vm441_vm0, %v427_v11  ;;  %v700_v24 = vld [vmem:[%s1440_s24 + $0x18] sm:$0xff]  ;;  %v421_v25 = vld [vmem:[%s1418_s19 + $0x60] sm:$0xff]  ;;  %v422_v26 = vld [vmem:[%s1418_s19 + $0x68] sm:$0xff]  ;;  %v430_v29 = vpack.c.bf16 %v420_v23, %v419_v22 }
  0x16   : > { %1235 = vmatprep.subr.bf16.mxu0 %v1314_v12  ;;  %726 = vperm.xlu1 %1311, %v699_v20   ;;  %v701_v27 = vld [vmem:[%s1440_s24 + $0x20] sm:$0xff]  ;;  %v702_v28 = vld [vmem:[%s1440_s24 + $0x28] sm:$0xff]  ;;  %v431_v30 = vpack.c.bf16 %v422_v26, %v421_v25  ;;  %v703_v31 = vld [vmem:[%s1440_s24 + $0x30] sm:$0xff] }
  0x17   : > { %v423_v32 = vld [vmem:[%s1418_s19 + $0x70] sm:$0xff]  ;;  %v424_v33 = vld [vmem:[%s1418_s19 + $0x78] sm:$0xff]  ;;  %v381_v35 = vld [vmem:[%s1458_s27] sm:$0xff] }
  0x18   : > { %721 = vperm.xlu0 %1310, %v698_v21   ;;  %v704_v34 = vld [vmem:[%s1440_s24 + $0x38] sm:$0xff]  ;;  %v382_v36 = vld [vmem:[%s1458_s27 + $0x8] sm:$0xff]  ;;  %v432_v37 = vpack.c.bf16 %v424_v33, %v423_v32  ;;  %v705_v38 = vld [vmem:[%s1440_s24 + $0x40] sm:$0xff] }
  0x19   : > { %1236 = vmatpush3.bf16.msra.mxu0 %v1314_v12  ;;  %v397_v39 = vpack.c.bf16 %v382_v36, %v381_v35  ;;  %v706_v40 = vld [vmem:[%s1440_s24 + $0x48] sm:$0xff]  ;;  %v707_v41 = vld [vmem:[%s1440_s24 + $0x50] sm:$0xff]  ;;  %v384_v43 = vld [vmem:[%s1458_s27 + $0x18] sm:$0xff] }
  0x1a   : > { %731 = vperm.xlu1 %1311, %v700_v24   ;;  %v383_v42 = vld [vmem:[%s1458_s27 + $0x10] sm:$0xff]  ;;  %v708_v44 = vld [vmem:[%s1440_s24 + $0x58] sm:$0xff]  ;;  %v385_v45 = vld [vmem:[%s1458_s27 + $0x20] sm:$0xff] }
  0x1b   : > { %v386_v46 = vld [vmem:[%s1458_s27 + $0x28] sm:$0xff]  ;;  %v398_v47 = vpack.c.bf16 %v384_v43, %v383_v42  ;;  %v709_v48 = vld [vmem:[%s1440_s24 + $0x60] sm:$0xff]  ;;  %v711_v52 = vld [vmem:[%s1440_s24 + $0x70] sm:$0xff] }
  0x1c   : > { %1222 = vmatmul.mubr.msk.bf16.gmra.mrb[4].mxu0 %vm441_vm0, %v428_v17  ;;  %736 = vperm.xlu0 %1310, %v701_v27   ;;  %v399_v50 = vpack.c.bf16 %v386_v46, %v385_v45  ;;  %v710_v51 = vld [vmem:[%s1440_s24 + $0x68] sm:$0xff]  ;;  %v387_v54 = vld [vmem:[%s1458_s27 + $0x30] sm:$0xff]  ;;  %v388_v55 = vld [vmem:[%s1458_s27 + $0x38] sm:$0xff] }
  0x1d   : > { %1225 = vmatprep.mubr.msk.bf16.mxu0 %vm441_vm0, %v429_v18  ;;  %v712_v56 = vld [vmem:[%s1440_s24 + $0x78] sm:$0xff]  ;;  %v389_v57 = vld [vmem:[%s1458_s27 + $0x40] sm:$0xff]  ;;  %v390_v58 = vld [vmem:[%s1458_s27 + $0x48] sm:$0xff]  ;;  %v400_v59 = vpack.c.bf16 %v388_v55, %v387_v54 }
  0x1e   : > { %741 = vperm.xlu1 %1311, %v702_v28   ;;  %v401_v61 = vpack.c.bf16 %v390_v58, %v389_v57  ;;  %v391_v62 = vld [vmem:[%s1458_s27 + $0x50] sm:$0xff]  ;;  %v392_v63 = vld [vmem:[%s1458_s27 + $0x58] sm:$0xff]  ;;  %v393_v0 = vld [vmem:[%s1458_s27 + $0x60] sm:$0xff] }
  0x1f   : > { %v394_v1 = vld [vmem:[%s1458_s27 + $0x68] sm:$0xff]  ;;  %v402_v2 = vpack.c.bf16 %v392_v63, %v391_v62  ;;  %v395_v4 = vld [vmem:[%s1458_s27 + $0x70] sm:$0xff]  ;;  %v396_v5 = vld [vmem:[%s1458_s27 + $0x78] sm:$0xff] }
  0x20   : > { %746 = vperm.xlu0 %1310, %v703_v31   ;;  %v403_v3 = vpack.c.bf16 %v394_v1, %v393_v0  ;;  %v404_v6 = vpack.c.bf16 %v396_v5, %v395_v4  ;;  %v1318_v7 = vld [vmem:[%s1600_s7 + $0x18] sm:$0xff]   ;;  %v1319_v8 = vld [vmem:[%s1600_s7 + $0x20] sm:$0xff]   ;;  %v1320_v9 = vld [vmem:[%s1600_s7 + $0x28] sm:$0xff]  }
  0x21   : > { %1259 = vmatprep.subr.bf16.mxu1 %v1318_v7  ;;  %v1321_v10 = vld [vmem:[%s1600_s7 + $0x30] sm:$0xff]   ;;  %v1322_v11 = vld [vmem:[%s1600_s7 + $0x38] sm:$0xff]   ;;  %v1526_v18 = vld [vmem:[%s1597_s4] ss:$0 sm:$0xff] }
  0x22   : > { %751 = vperm.xlu1 %1311, %v704_v34   ;;  %1260 = vmatpush3.bf16.msra.mxu1 %v1318_v7 }
  0x23   : > { %1261 = vmatprep.subr.bf16.mxu1 %v1319_v8 }
  0x24   : > { %1226 = vmatmul.mubr.msk.bf16.gmra.mrb[8].mxu0 %vm441_vm0, %v430_v29  ;;  %756 = vperm.xlu0 %1310, %v705_v38   ;;  %v1535_v29 = vld [vmem:[%s1599_s6] ss:$0 sm:$0xff] }
  0x25   : > { %1229 = vmatprep.mubr.msk.bf16.mxu0 %vm441_vm0, %v431_v30 }
  0x26   : > { %761 = vperm.xlu1 %1311, %v706_v40   ;;  %1262 = vmatpush3.bf16.msra.mxu1 %v1319_v8 }
  0x27   : > { %1263 = vmatprep.subr.bf16.mxu1 %v1320_v9 }
  0x28   : > { %766 = vperm.xlu0 %1310, %v707_v41  }
  0x2a   : > { %771 = vperm.xlu1 %1311, %v708_v44   ;;  %1264 = vmatpush3.bf16.msra.mxu1 %v1320_v9 }
  0x2b   : > { %1265 = vmatprep.subr.bf16.mxu1 %v1321_v10 }
  0x2c   : > { %1230 = vmatmul.mubr.msk.bf16.gmra.mrb[12].mxu0 %vm441_vm0, %v432_v37  ;;  %776 = vperm.xlu0 %1310, %v709_v48  }
  0x2d   : > { %1237 = vmatprep.mubr.msk.bf16.mxu0 %vm575_vm1, %v397_v39 }
  0x2e   : > { %781 = vperm.xlu1 %1311, %v710_v51   ;;  %1266 = vmatpush3.bf16.msra.mxu1 %v1321_v10 }
  0x2f   : > { %1267 = vmatprep.subr.bf16.mxu1 %v1322_v11 }
  0x30   : > { %786 = vperm.xlu0 %1310, %v711_v52  }
  0x32   : > { %791 = vperm.xlu1 %1311, %v712_v56   ;;  %1268 = vmatpush3.bf16.msra.mxu1 %v1322_v11 }
  0x34   : > { %1238 = vmatmul.mubr.msk.bf16.vlgmr.msra.gmra.mrb[0].mxu0 %vm575_vm1, %v398_v47 }
  0x35   : > { %1241 = vmatprep.mubr.msk.bf16.mxu0 %vm575_vm1, %v399_v50 }
  0x3c   : > { %1242 = vmatmul.mubr.msk.bf16.gmra.mrb[4].mxu0 %vm575_vm1, %v400_v59 }
  0x3d   : > { %1245 = vmatprep.mubr.msk.bf16.mxu0 %vm575_vm1, %v401_v61 }
  0x44   : > { %1246 = vmatmul.mubr.msk.bf16.gmra.mrb[8].mxu0 %vm575_vm1, %v402_v2 }
  0x45   : > { %1249 = vmatprep.mubr.msk.bf16.mxu0 %vm575_vm1, %v403_v3 }
  0x4c   : > { %1250 = vmatmul.mubr.msk.bf16.gmra.mrb[12].mxu0 %vm575_vm1, %v404_v6 }
  0x93   : > { %v717_v12 = vpop.permute.xlu0 %716 }
  0x94   : > { %v800_v22 = vmul.f32 %v1526_v18, %v717_v12 }
  0x95   : > { %v727_v13 = vpop.permute.xlu1 %726 }
  0x96   : > { %v802_v20 = vmul.f32 %v1526_v18, %v727_v13 }
  0x97   : > { %v722_v14 = vpop.permute.xlu0 %721 }
  0x98   : > { %v801_v27 = vmul.f32 %v1526_v18, %v722_v14 }
  0x99   : > { %v732_v15 = vpop.permute.xlu1 %731 }
  0x9a   : > { %v803_v24 = vmul.f32 %v1526_v18, %v732_v15 }
  0x9b   : > { %v737_v16 = vpop.permute.xlu0 %736 }
  0x9c   : > { %v804_v42 = vmul.f32 %v1526_v18, %v737_v16 }
  0x9d   : > { %v742_v17 = vpop.permute.xlu1 %741 }
  0x9e   : > { %v805_v49 = vmul.f32 %v1526_v18, %v742_v17 }
  0x9f   : > { %v747_v19 = vpop.permute.xlu0 %746 }
  0xa0   : > { %v806_v40 = vmul.f32 %v1526_v18, %v747_v19 }
  0xa1   : > { %v752_v21 = vpop.permute.xlu1 %751 }
  0xa2   : > { %v807_v46 = vmul.f32 %v1526_v18, %v752_v21 }
  0xa3   : > { %v757_v28 = vpop.permute.xlu0 %756 }
  0xa4   : > { %v808_v63 = vmul.f32 %v1526_v18, %v757_v28 }
  0xa5   : > { %v762_v34 = vpop.permute.xlu1 %761 }
  0xa6   : > { %v809_v6 = vmul.f32 %v1526_v18, %v762_v34 }
  0xa7   : > { %v767_v43 = vpop.permute.xlu0 %766 }
  0xa8   : > { %v810_v61 = vmul.f32 %v1526_v18, %v767_v43 }
  0xa9   : > { %v772_v50 = vpop.permute.xlu1 %771 }
  0xaa   : > { %v811_v3 = vmul.f32 %v1526_v18, %v772_v50 }
  0xab   : > { %v777_v58 = vpop.permute.xlu0 %776 }
  0xad   : > { %v782_v0 = vpop.permute.xlu1 %781 }
  0xaf   : > { %v787_v11 = vpop.permute.xlu0 %786 }
  0xb0   : > { %v814_v21 = vmul.f32 %v1526_v18, %v787_v11 }
  0xb1   : > { %v792_v17 = vpop.permute.xlu1 %791 }
 0x107   : > { %v1239_v23 = vpop.f32.mrb[0].mxu0 }
 0x108   : > { %v818_v25 = vadd.f32 %v1239_v23, %v802_v20  ;;  %v634_v26 = vpop.f32.mrb[1].mxu0  ;;  %v812_v23 = vmul.f32 %v1526_v18, %v777_v58 }
 0x109   : > { %v816_v30 = vadd.f32 %v800_v22, %v634_v26  ;;  %v1240_v31 = vpop.f32.mrb[2].mxu0  ;;  %v815_v26 = vmul.f32 %v1526_v18, %v792_v17 }
 0x10a   : > { %v819_v32 = vadd.f32 %v1240_v31, %v803_v24  ;;  %v637_v33 = vpop.f32.mrb[3].mxu0  ;;  %v841_v36 = vadd.f32 %v1535_v29, %v818_v25 }
 0x10b   : > { %v817_v35 = vadd.f32 %v801_v27, %v637_v33  ;;  %v839_v38 = vadd.f32 %v1535_v29, %v816_v30  ;;  %v813_v30 = vmul.f32 %v1526_v18, %v782_v0 }
 0x10c   : > { %v842_v37 = vadd.f32 %v1535_v29, %v819_v32 }
 0x10d   : > { %v840_v39 = vadd.f32 %v1535_v29, %v817_v35 }
 0x10e   : > { %v856_v41 = vpack.c.bf16 %v842_v37, %v841_v36 }
 0x10f   : > { %v1243_v44 = vpop.f32.mrb[4].mxu0  ;;  %v855_v45 = vpack.c.bf16 %v840_v39, %v839_v38 }
 0x110   : > { %v822_v47 = vadd.f32 %v1243_v44, %v806_v40  ;;  %v650_v48 = vpop.f32.mrb[5].mxu0 }
 0x111   : > { %v820_v51 = vadd.f32 %v804_v42, %v650_v48  ;;  %v1244_v52 = vpop.f32.mrb[6].mxu0  ;;  %1323 = vtanh.bf16 %v855_v45 }
 0x112   : > { %1325 = vtanh.bf16 %v856_v41  ;;  %v823_v53 = vadd.f32 %v1244_v52, %v807_v46  ;;  %v653_v54 = vpop.f32.mrb[7].mxu0  ;;  %v845_v56 = vadd.f32 %v1535_v29, %v822_v47  ;;  %v1169_v47 = vld [vmem:[%s1601_s8] ss:$0 sm:$0xff] }
 0x113   : > { %v821_v55 = vadd.f32 %v805_v49, %v653_v54  ;;  %v843_v59 = vadd.f32 %v1535_v29, %v820_v51 }
 0x114   : > { %v846_v57 = vadd.f32 %v1535_v29, %v823_v53 }
 0x115   : > { %v844_v60 = vadd.f32 %v1535_v29, %v821_v55 }
 0x116   : > { %v858_v62 = vpack.c.bf16 %v846_v57, %v845_v56 }
 0x117   : > { %v857_v1 = vpack.c.bf16 %v844_v60, %v843_v59  ;;  %v1247_v2 = vpop.f32.mrb[8].mxu0 }
 0x118   : > { %v826_v4 = vadd.f32 %v1247_v2, %v810_v61  ;;  %v666_v5 = vpop.f32.mrb[9].mxu0 }
 0x119   : > { %1327 = vtanh.bf16 %v857_v1  ;;  %v824_v7 = vadd.f32 %v808_v63, %v666_v5  ;;  %v1248_v8 = vpop.f32.mrb[10].mxu0 }
 0x11a   : > { %1329 = vtanh.bf16 %v858_v62  ;;  %v827_v9 = vadd.f32 %v1248_v8, %v811_v3  ;;  %v669_v10 = vpop.f32.mrb[11].mxu0  ;;  %v849_v14 = vadd.f32 %v1535_v29, %v826_v4 }
 0x11b   : > { %v825_v12 = vadd.f32 %v809_v6, %v669_v10  ;;  %v847_v19 = vadd.f32 %v1535_v29, %v824_v7 }
 0x11c   : > { %v1324_v13 = vpop.eup %1323  ;;  %v850_v15 = vadd.f32 %v1535_v29, %v827_v9 }
 0x11d   : > { %v1326_v16 = vpop.eup %1325  ;;  %v848_v20 = vadd.f32 %v1535_v29, %v825_v12  ;;  %1269 = vmatprep.mubr.bf16.mxu1 %v1324_v13 }
 0x11e   : > { %v860_v22 = vpack.c.bf16 %v850_v15, %v849_v14  ;;  %1270 = vmatmul.mubr.bf16.vlgmr.msra.gmra.mrb[0].mxu1 %v1326_v16 }
 0x11f   : > { %v859_v24 = vpack.c.bf16 %v848_v20, %v847_v19  ;;  %v1251_v25 = vpop.f32.mrb[12].mxu0 }
 0x120   : > { %v830_v27 = vadd.f32 %v1251_v25, %v814_v21  ;;  %v682_v28 = vpop.f32.mrb[13].mxu0 }
 0x121   : > { %1331 = vtanh.bf16 %v859_v24  ;;  %v828_v31 = vadd.f32 %v812_v23, %v682_v28  ;;  %v1252_v32 = vpop.f32.mrb[14].mxu0 }
 0x122   : > { %1333 = vtanh.bf16 %v860_v22  ;;  %v831_v33 = vadd.f32 %v1252_v32, %v815_v26  ;;  %v685_v34 = vpop.f32.mrb[15].mxu0  ;;  %v853_v37 = vadd.f32 %v1535_v29, %v830_v27 }
 0x123   : > { %v829_v35 = vadd.f32 %v813_v30, %v685_v34  ;;  %v851_v40 = vadd.f32 %v1535_v29, %v828_v31 }
 0x124   : > { %v1328_v36 = vpop.eup %1327  ;;  %v854_v38 = vadd.f32 %v1535_v29, %v831_v33 }
 0x125   : > { %v1330_v39 = vpop.eup %1329  ;;  %v852_v41 = vadd.f32 %v1535_v29, %v829_v35  ;;  %1273 = vmatprep.mubr.bf16.mxu1 %v1328_v36 }
 0x126   : > { %v862_v18 = vpack.c.bf16 %v854_v38, %v853_v37  ;;  %1274 = vmatmul.mubr.bf16.gmra.mrb[4].mxu1 %v1330_v39 }
 0x127   : > { %v861_v42 = vpack.c.bf16 %v852_v41, %v851_v40 }
 0x129   : > { %1335 = vtanh.bf16 %v861_v42 }
 0x12a   : > { %1337 = vtanh.bf16 %v862_v18 }
 0x12c   : > { %v1332_v43 = vpop.eup %1331 }
 0x12d   : > { %v1334_v44 = vpop.eup %1333  ;;  %1277 = vmatprep.mubr.bf16.mxu1 %v1332_v43 }
 0x12e   : > { %1278 = vmatmul.mubr.bf16.gmra.mrb[8].mxu1 %v1334_v44 }
 0x134   : > { %v1336_v45 = vpop.eup %1335 }
 0x135   : > { %v1338_v46 = vpop.eup %1337  ;;  %1281 = vmatprep.mubr.bf16.mxu1 %v1336_v45 }
 0x136   : > { %1282 = vmatmul.mubr.bf16.gmra.mrb[12].mxu1 %v1338_v46 }
 0x1f1   : > { %v1271_v29 = vpop.f32.mrb[0].mxu1 }
 0x1f2   : > { %v985_v48 = vadd.f32 %v1271_v29, %v1169_v47  ;;  %v976_v49 = vpop.f32.mrb[1].mxu1 }
 0x1f3   : > { %v977_v50 = vadd.f32 %v1169_v47, %v976_v49  ;;  %v1272_v51 = vpop.f32.mrb[2].mxu1 }
 0x1f4   : > { %1041 = vst [vmem:[%s1572_s13 + $0x10] sm:$0xff] %v985_v48  ;;  %v988_v52 = vadd.f32 %v1272_v51, %v1169_v47  ;;  %v979_v53 = vpop.f32.mrb[3].mxu1 }
 0x1f5   : > { %1039 = vst [vmem:[%s1572_s13] sm:$0xff] %v977_v50  ;;  %v980_v54 = vadd.f32 %v1169_v47, %v979_v53 }
 0x1f6   : > { %1042 = vst [vmem:[%s1572_s13 + $0x18] sm:$0xff] %v988_v52 }
 0x1f7   : > { %1040 = vst [vmem:[%s1572_s13 + $0x8] sm:$0xff] %v980_v54 }
 0x1f9   : > { %v1275_v55 = vpop.f32.mrb[4].mxu1 }
 0x1fa   : > { %v1001_v56 = vadd.f32 %v1275_v55, %v1169_v47  ;;  %v992_v57 = vpop.f32.mrb[5].mxu1 }
 0x1fb   : > { %v993_v58 = vadd.f32 %v1169_v47, %v992_v57  ;;  %v1276_v59 = vpop.f32.mrb[6].mxu1 }
 0x1fc   : > { %1045 = vst [vmem:[%s1572_s13 + $0x30] sm:$0xff] %v1001_v56  ;;  %v1004_v60 = vadd.f32 %v1276_v59, %v1169_v47  ;;  %v995_v61 = vpop.f32.mrb[7].mxu1 }
 0x1fd   : > { %1043 = vst [vmem:[%s1572_s13 + $0x20] sm:$0xff] %v993_v58  ;;  %v996_v62 = vadd.f32 %v1169_v47, %v995_v61 }
 0x1fe   : > { %1046 = vst [vmem:[%s1572_s13 + $0x38] sm:$0xff] %v1004_v60 }
 0x1ff   : > { %1044 = vst [vmem:[%s1572_s13 + $0x28] sm:$0xff] %v996_v62 }
 0x201   : > { %v1279_v63 = vpop.f32.mrb[8].mxu1 }
 0x202   : > { %v1017_v0 = vadd.f32 %v1279_v63, %v1169_v47  ;;  %v1008_v1 = vpop.f32.mrb[9].mxu1 }
 0x203   : > { %v1009_v2 = vadd.f32 %v1169_v47, %v1008_v1  ;;  %v1280_v3 = vpop.f32.mrb[10].mxu1 }
 0x204   : > { %1049 = vst [vmem:[%s1572_s13 + $0x50] sm:$0xff] %v1017_v0  ;;  %v1020_v4 = vadd.f32 %v1280_v3, %v1169_v47  ;;  %v1011_v5 = vpop.f32.mrb[11].mxu1 }
 0x205   : > { %1047 = vst [vmem:[%s1572_s13 + $0x40] sm:$0xff] %v1009_v2  ;;  %v1012_v6 = vadd.f32 %v1169_v47, %v1011_v5 }
 0x206   : > { %1050 = vst [vmem:[%s1572_s13 + $0x58] sm:$0xff] %v1020_v4 }
 0x207   : > { %1048 = vst [vmem:[%s1572_s13 + $0x48] sm:$0xff] %v1012_v6 }
 0x209   : > { %v1283_v7 = vpop.f32.mrb[12].mxu1 }
 0x20a   : > { %v1033_v8 = vadd.f32 %v1283_v7, %v1169_v47  ;;  %v1024_v9 = vpop.f32.mrb[13].mxu1 }
 0x20b   : > { %v1025_v10 = vadd.f32 %v1169_v47, %v1024_v9  ;;  %v1284_v11 = vpop.f32.mrb[14].mxu1 }
 0x20c   : > { %1053 = vst [vmem:[%s1572_s13 + $0x70] sm:$0xff] %v1033_v8  ;;  %v1036_v12 = vadd.f32 %v1284_v11, %v1169_v47  ;;  %v1027_v13 = vpop.f32.mrb[15].mxu1 }
 0x20d   : > { %1051 = vst [vmem:[%s1572_s13 + $0x60] sm:$0xff] %v1025_v10  ;;  %v1028_v14 = vadd.f32 %v1169_v47, %v1027_v13 }
 0x20e   : > { %1054 = vst [vmem:[%s1572_s13 + $0x78] sm:$0xff] %v1036_v12 }
 0x20f   : > { %1052 = vst [vmem:[%s1572_s13 + $0x68] sm:$0xff] %v1028_v14 }
 0x210 PF: > { %s19_s30 = sadd.s32 1, %s1345_s30  }
 0x211   : > { %p16_p4 = scmp.ge.s32.totalorder %s19_s30, 4  }
 0x213   :  { %18 = sbr.rel (!%p16_p4) target bundleno = 1 (0x1), region = 92 }

</bundles_post_ra>
